<compile_context>
chip_gen: v7x
topology: tpu7x:2x2x1
jax: 0.10.0
libtpu: 0.0.40
codegen_flags: <defaults>
</compile_context>

<pallas_src>
import functools

import jax
import jax.numpy as jnp
from jax.experimental import pallas as pl
from jax.experimental.pallas import tpu as pltpu


def se_kernel(x_ref, w1_ref, w2_ref, o_ref, *, inv_hw):
    # x_ref: (Bblk, C, HW)   w1_ref: (C, C//r)   w2_ref: (C//r, C)
    # o_ref: (Bblk, C, HW)
    # Squeeze: global average pool with fp32 accumulation.  The lane-pad region
    # of the partial last vreg is masked out of the logical-shape reduction.
    y = jnp.sum(x_ref[...].astype(jnp.float32), axis=-1) * inv_hw        # (Bblk, C)

    # Excitation: Linear -> ReLU -> Linear -> Sigmoid (no biases).  Tiny
    # (hidden = C // reduction); lowered naturally, not the bottleneck.
    h = jnp.dot(y, w1_ref[...].astype(jnp.float32),
                preferred_element_type=jnp.float32)                       # (Bblk, C//r)
    h = jnp.maximum(h, 0.0)
    s = jnp.dot(h, w2_ref[...].astype(jnp.float32),
                preferred_element_type=jnp.float32)                       # (Bblk, C)
    s = jax.nn.sigmoid(s)

    # Scale: re-read the tile from VMEM (keeps vreg pressure low for multi-MB
    # blocks) and broadcast the per-channel gate over the spatial lanes.
    o_ref[...] = x_ref[...] * s.astype(o_ref.dtype)[:, :, None]


def _vmem_capacity_bytes():
    """Physical VMEM per TensorCore; conservative default if the query fails."""
    try:
        info = pltpu.get_tpu_info()
        cap = getattr(info, "vmem_capacity_bytes", None)
        if cap:
            return int(cap)
    except Exception:
        pass
    return 64 << 20   # v7x per-TC VMEM — the tightest current generation.


def _choose_bblk(B, per_batch_bytes, target_block_bytes, max_pipelined_bytes):
    """Pick a batch block that divides B (no batch pad) under the VMEM budget."""
    cap = min(target_block_bytes // per_batch_bytes,
              max_pipelined_bytes // (4 * per_batch_bytes))
    cap = max(1, cap)
    if B <= 1:
        return 1
    # Divisors of B that keep >= 2 grid steps (both v7x TCs get work).
    cands = [d for d in range(1, B // 2 + 1) if B % d == 0 and d <= cap]
    if not cands:
        return 1
    best = max(cands)
    # Prefer an even number of grid steps (clean 2-way megacore split) as long
    # as it doesn't shrink the block by more than 2x.
    even = [d for d in cands if (B // d) % 2 == 0]
    if even:
        best_even = max(even)
        if best_even * 2 >= best:
            return best_even
    return best


def se_layer(x, w1, w2):
    """x: (B, C, H, W).  w1: (C, C//r).  w2: (C//r, C).  Returns (B, C, H, W)."""
    B, C, H, W = x.shape
    HW = H * W
    hid = w1.shape[1]
    itemsize = x.dtype.itemsize

    # No spatial pad, no batch pad: (B, C, HW) reshape is free, and the block's
    # last dim equals the full array dim.
    x_flat = x.reshape(B, C, HW)

    per_batch_bytes = C * HW * itemsize
    weight_bytes = (w1.size * w1.dtype.itemsize) + (w2.size * w2.dtype.itemsize)

    vmem_capacity = _vmem_capacity_bytes()
    # Pipelined budget: leave headroom for Mosaic internal scratch / relayouts.
    max_pipelined_bytes = max(8 << 20, min(vmem_capacity - (12 << 20), 96 << 20))
    target_block_bytes = 8 << 20

    bblk = _choose_bblk(B, per_batch_bytes, target_block_bytes, max_pipelined_bytes)
    grid_b = B // bblk

    # Double-buffered footprint = (in + out) x 2 buffers = 4 copies of a block
    # (+ double-buffered weights).  If even a one-batch block doesn't fit, fall
    # back to single-buffered in/out specs.
    single_buffer = (4 * per_batch_bytes + 2 * weight_bytes) > max_pipelined_bytes
    num_copies = 2 if single_buffer else 4
    block_bytes = bblk * per_batch_bytes
    pipelined_bytes = num_copies * block_bytes + 2 * weight_bytes
    # TODO(synk): add inner HW tiling (pltpu.emit_pipeline) for per-batch
    # footprints that don't fit single-buffered on v7x's 64 MiB VMEM.

    vmem_limit = int(min(vmem_capacity - (8 << 20),
                         max(32 << 20, int(pipelined_bytes * 1.25) + (2 << 20))))
    vmem_limit = max(vmem_limit, int(pipelined_bytes) + (1 << 20))

    x_spec_kwargs = {}
    o_spec_kwargs = {}
    if single_buffer:
        x_spec_kwargs = dict(pipeline_mode=pl.Buffered(1))
        o_spec_kwargs = dict(pipeline_mode=pl.Buffered(1))

    kernel = functools.partial(se_kernel, inv_hw=1.0 / float(HW))

    out_flat = pl.pallas_call(
        kernel,
        out_shape=jax.ShapeDtypeStruct((B, C, HW), x.dtype),
        grid_spec=pltpu.PrefetchScalarGridSpec(
            num_scalar_prefetch=0,
            grid=(grid_b,),
            in_specs=[
                pl.BlockSpec((bblk, C, HW), lambda b: (b, 0, 0), **x_spec_kwargs),
                pl.BlockSpec((C, hid), lambda b: (0, 0)),
                pl.BlockSpec((hid, C), lambda b: (0, 0)),
            ],
            out_specs=pl.BlockSpec((bblk, C, HW), lambda b: (b, 0, 0), **o_spec_kwargs),
        ),
        compiler_params=pltpu.CompilerParams(
            dimension_semantics=("parallel",),
            vmem_limit_bytes=vmem_limit,
        ),
    )(x_flat, w1, w2)

    return out_flat.reshape(B, C, H, W)


def se_layer_ref(x, w1, w2):
    """Pure-JAX reference mirroring the PyTorch forward."""
    y = jnp.mean(x, axis=(2, 3))                      # (B, C)  == AdaptiveAvgPool2d(1)
    h = jnp.maximum(y @ w1, 0.0)                      # (B, C//r)
    s = jax.nn.sigmoid(h @ w2)                        # (B, C)
    return x * s[:, :, None, None]


if __name__ == "__main__":
    key = jax.random.PRNGKey(0)

    # Small shapes consistent with the module (reduction=16 => channel >= 16).
    #   - (2, 32, 14, 14): HW=196 is NOT a multiple of 128 -> exercises the
    #     unpadded lane-masked reduce/store path.
    #   - (3, 32, 8, 8):   B=3 -> exercises the divisor-based batch blocking
    #     (no batch pad, odd grid).
    configs = [
        (2, 32, 14, 14, 16),
        (3, 32, 8, 8, 16),
    ]

    for (B, C, H, W, reduction) in configs:
        hidden = max(1, C // reduction)
        kx, k1, k2, key = jax.random.split(key, 4)

        x = jax.random.normal(kx, (B, C, H, W), dtype=jnp.float32)
        # PyTorch nn.Linear stores (out, in) and computes y @ W.T; we hold the
        # already-transposed (in, out) matrices.
        w1 = jax.random.normal(k1, (C, hidden), dtype=jnp.float32) * 0.1  # fc[0].weight.T
        w2 = jax.random.normal(k2, (hidden, C), dtype=jnp.float32) * 0.1  # fc[2].weight.T

        out = jax.block_until_ready(se_layer(x, w1, w2))
        ref = se_layer_ref(x, w1, w2)
        assert out.shape == (B, C, H, W)
        assert jnp.allclose(out, ref, atol=1e-5, rtol=1e-5), \
            f"mismatch vs reference for shape {(B, C, H, W)}"

    print("KERNEL_OK")
</pallas_src>

<mosaic_0001>
module attributes {stable_mosaic.version = 11 : i64} {
  func.func @se_kernel(%arg0: i32, %arg1: memref<1x32x196xf32, #tpu.memory_space<vmem>>, %arg2: memref<32x2xf32, #tpu.memory_space<vmem>>, %arg3: memref<2x32xf32, #tpu.memory_space<vmem>>, %arg4: memref<1x32x196xf32, #tpu.memory_space<vmem>>) attributes {dimension_semantics = [#tpu.dimension_semantics<parallel>], iteration_bounds = array<i64: 2>, scalar_prefetch = 0 : i64, scratch_operands = 0 : i64, tpu.core_type = #tpu.core_type<tc>, window_params = [{transform_indices = @transform_0, window_bounds = array<i64: 1, 32, 196>}, {pipeline_mode = #tpu.pipeline_mode<synchronous>, transform_indices = @transform_1, window_bounds = array<i64: 32, 2>}, {pipeline_mode = #tpu.pipeline_mode<synchronous>, transform_indices = @transform_2, window_bounds = array<i64: 2, 32>}, {transform_indices = @transform_3, window_bounds = array<i64: 1, 32, 196>}]} {
    %c0 = arith.constant 0 : index
    %c0_0 = arith.constant 0 : index
    %c0_1 = arith.constant 0 : index
    %0 = vector.load %arg1[%c0, %c0_0, %c0_1] : memref<1x32x196xf32, #tpu.memory_space<vmem>>, vector<1x32x196xf32>
    %cst = arith.constant dense<0.000000e+00> : vector<1x32xf32>
    %1 = vector.multi_reduction <add>, %0, %cst [2] : vector<1x32x196xf32> to vector<1x32xf32>
    %cst_2 = arith.constant 0.00510204071 : f32
    %2 = vector.broadcast %cst_2 : f32 to vector<1x32xf32>
    %3 = arith.mulf %1, %2 : vector<1x32xf32>
    %c0_3 = arith.constant 0 : index
    %c0_4 = arith.constant 0 : index
    %4 = vector.load %arg2[%c0_3, %c0_4] : memref<32x2xf32, #tpu.memory_space<vmem>>, vector<32x2xf32>
    %cst_5 = arith.constant dense<0.000000e+00> : vector<1x2xf32>
    %5 = tpu.matmul %3, %4, %cst_5 {dimension_numbers = #tpu.dot_dimension_numbers<[1], [0], [0], [1], [0, 0, 1, 1], [], []>} : vector<1x32xf32>, vector<32x2xf32>, vector<1x2xf32> -> vector<1x2xf32>
    %cst_6 = arith.constant 0.000000e+00 : f32
    %6 = vector.broadcast %cst_6 : f32 to vector<1x2xf32>
    %7 = arith.maximumf %5, %6 : vector<1x2xf32>
    %c0_7 = arith.constant 0 : index
    %c0_8 = arith.constant 0 : index
    %8 = vector.load %arg3[%c0_7, %c0_8] : memref<2x32xf32, #tpu.memory_space<vmem>>, vector<2x32xf32>
    %cst_9 = arith.constant dense<0.000000e+00> : vector<1x32xf32>
    %9 = tpu.matmul %7, %8, %cst_9 {dimension_numbers = #tpu.dot_dimension_numbers<[1], [0], [0], [1], [0, 0, 1, 1], [], []>} : vector<1x2xf32>, vector<2x32xf32>, vector<1x32xf32> -> vector<1x32xf32>
    %10 = arith.negf %9 : vector<1x32xf32>
    %11 = math.exp %10 : vector<1x32xf32>
    %cst_10 = arith.constant 1.000000e+00 : f32
    %12 = vector.broadcast %cst_10 : f32 to vector<1x32xf32>
    %13 = arith.addf %12, %11 : vector<1x32xf32>
    %14 = arith.divf %12, %13 : vector<1x32xf32>
    %c0_11 = arith.constant 0 : index
    %c0_12 = arith.constant 0 : index
    %c0_13 = arith.constant 0 : index
    %15 = vector.load %arg1[%c0_11, %c0_12, %c0_13] : memref<1x32x196xf32, #tpu.memory_space<vmem>>, vector<1x32x196xf32>
    %16 = vector.shape_cast %14 : vector<1x32xf32> to vector<1x32x1xf32>
    %17 = vector.broadcast %16 : vector<1x32x1xf32> to vector<1x32x196xf32>
    %18 = arith.mulf %15, %17 : vector<1x32x196xf32>
    %c0_14 = arith.constant 0 : index
    %c0_15 = arith.constant 0 : index
    %c0_16 = arith.constant 0 : index
    %19 = vector.load %arg4[%c0_14, %c0_15, %c0_16] : memref<1x32x196xf32, #tpu.memory_space<vmem>>, vector<1x32x196xf32>
    tpu.vector_store %arg4[%c0_14, %c0_15, %c0_16], %18 {strides = array<i32>} : memref<1x32x196xf32, #tpu.memory_space<vmem>>, vector<1x32x196xf32>,
    return
  }
  func.func @transform_0(%arg0: i32) -> (i32, i32, i32) {
    %c0_i32 = arith.constant 0 : i32
    %c0_i32_0 = arith.constant 0 : i32
    %c0_i32_1 = arith.constant 0 : i32
    return %arg0, %c0_i32, %c0_i32_0 : i32, i32, i32
  }
  func.func @transform_1(%arg0: i32) -> (i32, i32) {
    %c0_i32 = arith.constant 0 : i32
    %c0_i32_0 = arith.constant 0 : i32
    %c0_i32_1 = arith.constant 0 : i32
    return %c0_i32, %c0_i32_0 : i32, i32
  }
  func.func @transform_2(%arg0: i32) -> (i32, i32) {
    %c0_i32 = arith.constant 0 : i32
    %c0_i32_0 = arith.constant 0 : i32
    %c0_i32_1 = arith.constant 0 : i32
    return %c0_i32, %c0_i32_0 : i32, i32
  }
  func.func @transform_3(%arg0: i32) -> (i32, i32, i32) {
    %c0_i32 = arith.constant 0 : i32
    %c0_i32_0 = arith.constant 0 : i32
    %c0_i32_1 = arith.constant 0 : i32
    return %arg0, %c0_i32, %c0_i32_0 : i32, i32, i32
  }
}

</mosaic_0001>

<bundles_post_ra>
// kernel: tpu_custom_call.1
= control target key start
LH: loop header
LB: loop body
LE: loop exit
PB: predicated region body
PF: predicated region fallthrough
CT: control target
= control target key end

     0   :  { %8 = vsyncpa [#allocation3], 0  ;;  %s988_s0 = inlined_call_operand.hbm [shape: f32[2,32,196], index: 0, kind: input, shape index: {}]   ;;  %s989_s1 = inlined_call_operand.vmem [shape: f32[32,2], index: 1, kind: input, shape index: {}]   ;;  %s990_s2 = inlined_call_operand.vmem [shape: f32[2,32], index: 2, kind: input, shape index: {}]   ;;  %s991_s3 = inlined_call_operand.hbm [shape: f32[2,32,196], index: 3, kind: output, shape index: {}]  }
   0x1   :  { %10 = vsyncpa [#allocation3 + $0x1], 0 }
   0x2   :  { %11 = vsyncpa [#allocation4], 0 }
   0x3   :  { %13 = vsyncpa [#allocation4 + $0x1], 0  ;;  %s767_s12 = smov 0   ;;  %s769_s13 = smov 0  }
   0x4   :  { %s771_s14 = smov 0   ;;  %s773_s15 = smov 0  }
   0x5 LB: > { %s788_s16 = sadd.s32 4294967295, %s736_s15   ;;  %s534_s17 = sadd.s32 4294967294, %s736_s15   ;;  %s736_s15 = sphi %s773_s15, %s1004_s15   ;;  %s732_s14 = sphi %s771_s14, %s1003_s14   ;;  %s728_s13 = sphi %s769_s13, %s1002_s13   ;;  %s724_s12 = sphi %s767_s12, %s1001_s12  }
   0x6   : > { %s792_s18 = sadd.s32 1, %s736_s15   ;;  %s26_s19 = sadd.s32 1, %s732_s14 }
   0x7   : > { %s23_s20 = ssub.s32 %s736_s15, %s792_s18  ;;  %p33_p0 = scmp.ne.s32.totalorder %s732_s14, %s728_s13 }
   0x8   : > { %p24_p1 = scmp.eq.s32.totalorder %s23_s20, 0  ;;  %p34_p2 = scmp.eq.s32.totalorder %s736_s15, 0 }
   0x9   : > { %p39_p3 = scmp.ne.s32.totalorder %s728_s13, %s724_s12  ;;  %p40_p4 = scmp.eq.s32.totalorder %s788_s16, 0 }
   0xa   : > { %s804_s21 = scalar_select %p24_p1, %s732_s14, %s26_s19  }
   0xb   : > { %p806_p5 = por %p34_p2, %p33_p0  ;;  %p810_p6 = por %p40_p4, %p39_p3 }
   0xc   : > { %p105_p7 = scmp.eq.s32.totalorder %s788_s16, 1  ;;  %p111_p8 = scmp.eq.s32.totalorder %s534_s17, 1 }
   0xd   : > { %p595_p10 = scmp.lt.s32.totalorder %s736_s15, 2  ;;  %s137_s26 = sand.u32 1, %s732_s14  }
   0xe   : > { %p817_p11 = por %p105_p7, %p33_p0  ;;  %p821_p12 = por %p111_p8, %p39_p3 }
   0xf   : > { %s552_s27 = sshll.u32 %s736_s15, 10  ;;  %s537_s28 = sshll.u32 %s137_s26, 6 }
  0x10   : > { %s995_s24 = scalar_select %p817_p11, 1, 0 }
  0x11   : > { %s996_s25 = scalar_select %p821_p12, 1, 0 }
  0x12   : > { %s830_s4 = scalar_lea.hbm %s988_s0, %s552_s27  ;;  %s141_s5 = scalar_lea.vmem [#allocation2], %s537_s28 }
  0x13   : > { %s148_s6 = sshll.u32 %s141_s5, 4  ;;  %p834_p13 = pnand %p595_p10, %p806_p5  ;;  %s838_s6 = int_to_ptr.vmem [resolvable:$true] %s148_s6 }
  0x14   : > { %s840_s8 = scalar_lea.sflag [#allocation3], %s137_s26  ;;  %s640_s9 = scalar_lea.hbm %s830_s4, 1024 }
  0x15   : > { %p641_p0 = scmp.ne.s32.totalorder %s830_s4, %s640_s9  ;;  %p642_p1 = pneg %p834_p13 }
  0x16   : > { %s645_s17 = scalar_lea.hbm %s988_s0, 2048  ;;  %p646_p4 = scmp.lt.u32.totalorder %s830_s4, %s988_s0 }
  0x17   : > { %p643_p2 = pnand %p642_p1, %p641_p0  ;;  %p647_p5 = scmp.lt.u32.totalorder %s645_s17, %s640_s9 }
  0x18   : > { %p649_p8 = scmp.lt.u32.totalorder %s640_s9, %s830_s4 }
  0x19   : > { %p644_p3 = pneg %p643_p2  ;;  %p648_p7 = por %p647_p5, %p646_p4 }
  0x1b   : > { %p650_p10 = por %p649_p8, %p648_p7 }
  0x1d   : > { %p651_p9 = pnand %p650_p10, %p644_p3 }
  0x1f   : > { %654 = shalt.err (!%p651_p9)
}
  0x20   : > { %s655_s22 = scalar_lea.vmem %s838_s6, 1024  ;;  %s738_s26 = smov [#allocation2]  }
  0x21   : > { %p656_p0 = scmp.ne.s32.totalorder %s838_s6, %s655_s22  ;;  %s660_s27 = sshll.u32 %s738_s26, 4  ;;  %s661_s27 = int_to_ptr.vmem [resolvable:$false] %s660_s27 }
  0x22   : > { %s662_s28 = scalar_lea.vmem %s661_s27, 2048  ;;  %p663_p11 = scmp.lt.s32.totalorder %s838_s6, %s661_s27 }
  0x23   : > { %p658_p2 = pnand %p656_p0, %p642_p1  ;;  %p664_p4 = scmp.lt.s32.totalorder %s662_s28, %s655_s22 }
  0x25   : > { %p659_p12 = pneg %p658_p2  ;;  %p665_p5 = por %p664_p4, %p663_p11 }
  0x27   : > { %p666_p7 = pnand %p665_p5, %p659_p12 }
  0x29   : > { %669 = shalt.err (!%p666_p7)
}
  0x2a   : > { %s739_s29 = smov 256   ;;  %s740_s30 = smov 16  }
  0x2b   : > { %590 = dma.hbm_to_vmem [thread:$0]  (!%p834_p13), %s830_s4, 1024, %s838_s6, %s840_s8, %s739_s29, %s739_s29, %s740_s30  }
  0x2c   : > { %p540_p9 = scmp.ge.s32.totalorder %s736_s15, 1  ;;  %p156_p1 = scmp.lt.s32.totalorder %s736_s15, 3 }
  0x2e   : > { %p157_p3 = pnand %p540_p9, %p156_p1 }
  0x2f   : > { %s871_s5 = sand.u32 (!%p157_p3), 1, %s728_s13  }
  0x30   : > { %160 = sbr.rel (%p157_p3) target bundleno = 807 (0x327), region = 32  ;;  %s541_s9 = sshll.u32 (!%p157_p3), %s871_s5, 6 }
  0x31   : > { %s163_s10 = scalar_lea.sflag (!%p157_p3), [#allocation3], %s871_s5  ;;  %s166_s11 = scalar_lea.vmem (!%p157_p3), [#allocation2], %s541_s9 }
  0x37   : > { %715 = dma.done.wait (%p810_p6), %s163_s10, 1024  }
  0x38   : > { %717 = vsyncadd (%p810_p6), %s163_s10, 4294966272  ;;  %vm197_vm0 = vcmask 556032   ;;  %v881_v0 = vld [vmem:[%s166_s11] sm:$0xff]  ;;  %v883_v1 = vld [vmem:[%s166_s11 + $0x8] sm:$0xff]  ;;  %v741_v19 = vmov 0.0|0.0   ;;  %vm742_vm1 = vmmov 0   ;;  %v226_v24 = vlaneseq }
  0x39   : > { %v885_v2 = vld [vmem:[%s166_s11 + $0x20] sm:$0xff]  ;;  %v198_v3 = vsel %vm197_vm0, %v883_v1, 0.0  ;;  %v889_v4 = vld [vmem:[%s166_s11 + $0x28] sm:$0xff]  ;;  %v891_v5 = vld [vmem:[%s166_s11 + $0x10] sm:$0xff]  ;;  %577 = vmatprep.subr.bf16.mxu0 %v741_v19  ;;  %v743_v23 = vmov 0.0   ;;  %vm237_vm2 = vcmask 130112  }
  0x3a   : > { %v893_v6 = vld [vmem:[%s166_s11 + $0x18] sm:$0xff]  ;;  %v199_v7 = vadd.f32 %v198_v3, %v881_v0  ;;  %v206_v8 = vsel %vm197_vm0, %v889_v4, 0.0  ;;  %v900_v10 = vld [vmem:[%s166_s11 + $0x30] sm:$0xff]  ;;  %v218_v16 = vld [vmem:[%s989_s1] sm:$0xff]  ;;  %569 = vmatprep.mubr.msk.f32.mxu0 %vm742_vm1, %v743_v23  ;;  %572 = vmatprep.subr.mxu1 %v743_v23  ;;  %v227_v25 = vand.u32 127, %v226_v24  ;;  %v229_v26 = vshrl.u32 %v226_v24, 7 }
  0x3b   : > { %v202_v9 = vsel %vm197_vm0, %v893_v6, 0.0  ;;  %v902_v11 = vld [vmem:[%s166_s11 + $0x38] sm:$0xff]  ;;  %v207_v12 = vadd.f32 %v206_v8, %v885_v2  ;;  %v219_v17 = vld [vmem:[%s989_s1 + $0x8] sm:$0xff]  ;;  %v220_v20 = vld [vmem:[%s989_s1 + $0x10] sm:$0xff]  ;;  %574 = vmatprep.mubr.msk.f32.mxu1 %vm742_vm1, %v743_v23  ;;  %vm244_vm3 = vcmask 195712   ;;  %vm251_vm4 = vcmask 261312  }
  0x3c   : > { %v210_v13 = vsel %vm197_vm0, %v902_v11, 0.0  ;;  %200 = vadd.xlane.f32.xlu0 %v199_v7  ;;  %v203_v14 = vadd.f32 %v202_v9, %v891_v5  ;;  %v578_v18 = vpack.c.bf16 %v219_v17, %v218_v16  ;;  %v221_v21 = vld [vmem:[%s989_s1 + $0x18] sm:$0xff]  ;;  %v232_v27 = vadd.s32 4294967288, %v227_v25  ;;  %v327_v49 = vld [vmem:[%s990_s2] sm:$0x3]  ;;  %s188_s27 = scalar_lea.vmem [#allocation5], %s541_s9 }
  0x3d   : > { %208 = vadd.xlane.f32.xlu1 %v207_v12  ;;  %v211_v15 = vadd.f32 %v210_v13, %v900_v10  ;;  %v581_v22 = vpack.c.bf16 %v221_v21, %v220_v20  ;;  %v239_v29 = vadd.s32 4294967280, %v227_v25  ;;  %v246_v30 = vadd.s32 4294967272, %v227_v25  ;;  %s461_s28 = sshll.u32 %s188_s27, 4  ;;  %s553_s29 = sshll.u32 %s788_s16, 10  ;;  %s935_s28 = int_to_ptr.vmem [resolvable:$true] %s461_s28 }
  0x3e   : > { %579 = vmatpush3.bf16.msra.mxu0 %v578_v18  ;;  %v230_v32 = vsub.s32 %v227_v25, %v229_v26  ;;  %v235_v34 = vsub.s32 %v232_v27, %v229_v26  ;;  %vm253_vm5 = vcmask 261120   ;;  %vm332_vm6 = vcmask 1041408   ;;  %s941_s10 = scalar_lea.hbm %s991_s3, %s553_s29  ;;  %s448_s16 = scalar_lea.sflag [#allocation4], %s871_s5 }
  0x3f   : > { %580 = vmatprep.subr.bf16.mxu0 %v741_v19  ;;  %v242_v35 = vsub.s32 %v239_v29, %v229_v26  ;;  %v249_v38 = vsub.s32 %v246_v30, %v229_v26  ;;  %573 = vmatpush3.msk.msra.mxu1 %vm332_vm6, %v327_v49  ;;  %vm328_vm7 = vcmask 15360   ;;  %v414_v58 = vsub.s32 0, %v229_v26  ;;  %s670_s11 = scalar_lea.vmem %s935_s28, 1024  ;;  %p998_p11 = scmp.ne.s32.totalorder %s995_s24, 0 }
  0x40   : > { %204 = vadd.xlane.f32.xlu0 %v203_v14  ;;  %p671_p6 = scmp.ne.s32.totalorder %s935_s28, %s670_s11  ;;  %s744_s23 = smov [#allocation5]  }
  0x41   : > { %212 = vadd.xlane.f32.xlu1 %v211_v15  ;;  %s674_s4 = sshll.u32 %s744_s23, 4  ;;  %s675_s4 = int_to_ptr.vmem [resolvable:$false] %s674_s4 }
  0x42   : > { %582 = vmatpush3.bf16.msra.mxu0 %v581_v22  ;;  %p672_p12 = pnand %p671_p6, %p998_p11  ;;  %s676_s6 = scalar_lea.vmem %s675_s4, 2048 }
  0x43   : > { %p677_p8 = scmp.lt.s32.totalorder %s935_s28, %s675_s4  ;;  %p678_p10 = scmp.lt.s32.totalorder %s676_s6, %s670_s11 }
  0x44   : > { %p673_p13 = pneg %p672_p12 }
  0x45   : > { %p679_p0 = por %p678_p10, %p677_p8 }
  0x47   : > { %p680_p2 = pnand %p679_p0, %p673_p13 }
  0xc9   : > { %v201_v28 = vpop.xlane.xlu0 %200 }
  0xca   : > { %v209_v31 = vpop.xlane.xlu1 %208  ;;  %v214_v33 = vmul.f32 0.0051020407, %v201_v28 }
  0xcb   : > { %v216_v36 = vmul.f32 0.0051020407, %v209_v31 }
  0xcc   : > { %v231_v42 = vrot.slane %v214_v33, %v230_v32 }
  0xcd   : > { %v205_v37 = vpop.xlane.xlu0 %204  ;;  %v243_v44 = vrot.slane %v216_v36, %v242_v35 }
  0xce   : > { %v215_v39 = vmul.f32 0.0051020407, %v205_v37  ;;  %v213_v40 = vpop.xlane.xlu1 %212 }
  0xcf   : > { %v217_v41 = vmul.f32 0.0051020407, %v213_v40 }
  0xd0   : > { %v236_v43 = vrot.slane %v215_v39, %v235_v34 }
  0xd1   : > { %v250_v45 = vrot.slane %v217_v41, %v249_v38 }
  0xd2   : > { %v238_v46 = vsel %vm237_vm2, %v236_v43, %v231_v42 }
  0xd3   : > { %v245_v47 = vsel %vm244_vm3, %v243_v44, %v238_v46 }
  0xd4   : > { %v252_v48 = vsel %vm251_vm4, %v250_v45, %v245_v47 }
  0xd5   : > { %570 = vmatmul.mubr.msk.f32.vlgmr.msra.gmra.mrb[0].mxu0 %vm253_vm5, %v252_v48 }
 0x1a8   : > { %v322_v50 = vpop.f32.mrb[0].mxu0 }
 0x1a9   : > { %v326_v51 = vmax.f32 %v322_v50, 0.0  ;;  %v571_v52 = vpop.f32.mrb[1].mxu0 }
 0x1ab   : > { %575 = vmatmul.mubr.msk.f32.vlgmr.msra.gmra.mrb[0].mxu1 %vm328_vm7, %v326_v51 }
 0x27e   : > { %v402_v53 = vpop.f32.mrb[0].mxu1 }
 0x27f   : > { %v546_v54 = vmul.f32 -1.442695, %v402_v53  ;;  %v576_v55 = vpop.f32.mrb[1].mxu1 }
 0x281   : > { %636 = vpow2.f32 %v546_v54 }
 0x28b   : > { %v637_v56 = vpop.eup %636 }
 0x28c   : > { %v409_v57 = vadd.f32 1.0, %v637_v56 }
 0x28e   : > { %638 = vrcp.f32 %v409_v57 }
 0x298   : > { %v639_v59 = vpop.eup %638 }
 0x299   : > { %v415_v60 = vrot.slane %v639_v59, %v414_v58 }
 0x29b   : > { %421 = vbcast.lane.b32.xlu1 %v415_v60, 264  ;;  %417 = vbcast.lane.b32.xlu0 %v415_v60, 256 }
 0x29f   : > { %425 = vbcast.lane.b32.xlu1 %v415_v60, 272 }
 0x2a3   : > { %429 = vbcast.lane.b32.xlu1 %v415_v60, 280 }
 0x30d   : > { %v422_v61 = vpop.permute.xlu1 %421  ;;  %v418_v62 = vpop.permute.xlu0 %417 }
 0x30e   : > { %v433_v63 = vmul.f32 %v422_v61, %v891_v5  ;;  %v434_v3 = vmul.f32 %v422_v61, %v893_v6  ;;  %v431_v7 = vmul.f32 %v418_v62, %v881_v0  ;;  %v432_v8 = vmul.f32 %v418_v62, %v883_v1 }
 0x310   : > { %441 = vst [vmem:[%s188_s27 + $0x10] sm:$0xff] %v433_v63  ;;  %442 = vst.msk [vmem:[%s188_s27 + $0x18] sm:$0xff] %vm197_vm0, %v434_v3 }
 0x311   : > { %439 = vst [vmem:[%s188_s27] sm:$0xff] %v431_v7  ;;  %440 = vst.msk [vmem:[%s188_s27 + $0x8] sm:$0xff] %vm197_vm0, %v432_v8  ;;  %v426_v9 = vpop.permute.xlu1 %425 }
 0x312   : > { %v435_v5 = vmul.f32 %v426_v9, %v885_v2  ;;  %v436_v6 = vmul.f32 %v426_v9, %v889_v4 }
 0x314   : > { %443 = vst [vmem:[%s188_s27 + $0x20] sm:$0xff] %v435_v5  ;;  %444 = vst.msk [vmem:[%s188_s27 + $0x28] sm:$0xff] %vm197_vm0, %v436_v6 }
 0x315   : > { %v430_v0 = vpop.permute.xlu1 %429 }
 0x316   : > { %v437_v1 = vmul.f32 %v430_v0, %v900_v10  ;;  %v438_v2 = vmul.f32 %v430_v0, %v902_v11 }
 0x318   : > { %445 = vst [vmem:[%s188_s27 + $0x30] sm:$0xff] %v437_v1  ;;  %446 = vst.msk [vmem:[%s188_s27 + $0x38] sm:$0xff] %vm197_vm0, %v438_v2 }
 0x319   : > { %683 = shalt.err (!%p680_p2)
}
 0x31a   : > { %s684_s7 = scalar_lea.hbm %s941_s10, 1024  ;;  %s688_s19 = scalar_lea.hbm %s991_s3, 2048 }
 0x31b   : > { %p685_p4 = scmp.ne.s32.totalorder %s941_s10, %s684_s7  ;;  %p689_p9 = scmp.lt.u32.totalorder %s941_s10, %s991_s3 }
 0x31c   : > { %p690_p1 = scmp.lt.u32.totalorder %s688_s19, %s684_s7  ;;  %p692_p6 = scmp.lt.u32.totalorder %s684_s7, %s941_s10 }
 0x31d   : > { %p686_p5 = pnand %p685_p4, %p998_p11 }
 0x31e   : > { %p691_p3 = por %p690_p1, %p689_p9 }
 0x31f   : > { %p687_p7 = pneg %p686_p5 }
 0x320   : > { %p693_p12 = por %p692_p6, %p691_p3 }
 0x322   : > { %p694_p13 = pnand %p693_p12, %p687_p7 }
 0x324   : > { %697 = shalt.err (!%p694_p13)
}
 0x325   : > { %s745_s26 = smov 256   ;;  %s746_s27 = smov 16  }
 0x326   : > { %585 = dma.vmem_to_hbm [thread:$0]  (%p998_p11), %s935_s28, 1024, %s941_s10, %s448_s16, %s745_s26, %s745_s26, %s746_s27  }
 0x327 PF: > { %s476_s29 = sand.u32 1, %s724_s12   ;;  %p999_p8 = scmp.ne.s32.totalorder %s996_s25, 0 }
 0x328   : > { %p1000_p10 = scmp.ge.s32.totalorder %s736_s15, 2  ;;  %s477_s30 = scalar_lea.sflag [#allocation4], %s476_s29 }
 0x32a   : > { %p592_p0 = pnand %p1000_p10, %p999_p8 }
 0x32c   : > { %719 = dma.done.wait (!%p592_p0), %s477_s30, 1024  }
 0x32d   : > { %721 = vsyncadd (!%p592_p0), %s477_s30, 4294966272  ;;  %p16_p2 = scmp.ge.s32.totalorder %s792_s18, 4   ;;  %s1001_s12 = smov %s728_s13 }
 0x32e   : > { %s1002_s13 = smov %s732_s14  ;;  %s1003_s14 = smov %s804_s21 }
 0x32f   : > { %s1004_s15 = smov %s792_s18  ;;  %18 = sbr.rel (!%p16_p2) target bundleno = 5 (0x5), region = 77 }
 0x336   :  { %482 = vsyncpa [#allocation3], 1 }
 0x337   :  { %484 = vsyncpa [#allocation3 + $0x1], 1 }
 0x338   :  { %485 = vsyncpa [#allocation4], 1 }
 0x339   :  { %487 = vsyncpa [#allocation4 + $0x1], 1 }

</bundles_post_ra>
